<compile_context>
chip_gen: v7x
topology: tpu7x:2x2x1
jax: 0.10.0
libtpu: 0.0.40
codegen_flags: <defaults>
</compile_context>

<pallas_src>
import functools
import math

import jax
import jax.numpy as jnp
from jax.experimental import pallas as pl
from jax.experimental.pallas import tpu as pltpu


# ----------------------------------------------------------------------------
# Tile-size helpers (VMEM-budget aware, independent of batch size).
# ----------------------------------------------------------------------------
def _normalize_tile(size, dim, *, vmem_budget=12 << 20, cap=1024):
    """Row tile for init normalization: biggest multiple-of-8 tile (<=cap) whose
    double-buffered in/out blocks + f32 temporaries fit `vmem_budget`."""
    rows = vmem_budget // (6 * dim * 4)            # ~6 f32-sized blocks live
    rows = min(cap, rows - rows % 8)
    if size <= max(rows, 8):
        return size                                 # single full block
    return max(rows, 8)                             # ragged last tile handled by cdiv grid


def _update_tile(size, batch, dim, itemsize, *, vmem_budget=8 << 20, cap=512):
    """Row tile for the enqueue kernel.

    Must be a multiple of 8 and divide gcd(size, batch) so that every pointer
    value this module can produce keeps the write window tile-aligned.
    Returns None when no such tile exists -> caller uses the pure-JAX fallback.
    """
    g = math.gcd(size, batch)
    if g % 8 != 0:
        return None
    budget_rows = (vmem_budget // (4 * dim * itemsize)) // 8 * 8
    t = max(8, min(cap, budget_rows, g))
    while g % t:
        t -= 8
    return t


# ----------------------------------------------------------------------------
# Kernel 1: per-slot L2 normalization of the freshly initialized bank.
# In (size, dim) layout this is a row normalization over the last axis,
# equivalent to torch.nn.functional.normalize(bank_(dim,size), dim=0).
# ----------------------------------------------------------------------------
def _normalize_kernel(x_ref, o_ref):
    x = x_ref[...].astype(jnp.float32)
    sq = jnp.sum(x * x, axis=-1, keepdims=True)
    # torch.nn.functional.normalize clamps ||x|| at eps=1e-12 -> sq at 1e-24.
    o_ref[...] = (x * jax.lax.rsqrt(jnp.maximum(sq, 1e-24))).astype(o_ref.dtype)


def normalize_rows(bank, *, tile=None):
    size, dim = bank.shape
    if tile is None:
        tile = _normalize_tile(size, dim)
    return pl.pallas_call(
        _normalize_kernel,
        out_shape=jax.ShapeDtypeStruct((size, dim), bank.dtype),
        grid=(pl.cdiv(size, tile),),               # ragged last tile is fine
        in_specs=[pl.BlockSpec((tile, dim), lambda i: (i, 0))],
        out_specs=pl.BlockSpec((tile, dim), lambda i: (i, 0)),
        compiler_params=pltpu.CompilerParams(
            dimension_semantics=("parallel",),     # independent tiles (v7x 2 TCs)
            vmem_limit_bytes=32 * 1024 * 1024),    # explicit: v5e default is 16 MiB
    )(bank)


# ----------------------------------------------------------------------------
# Kernel 2: dequeue-and-enqueue as a tile-aligned block copy.
#
# For every pointer reachable by this module with a fixed per-call batch
# (ptr in {0, batch, 2*batch, ...}), a tile dividing gcd(batch, size) makes the
# window [ptr, ptr + n_write) tile-aligned with a tile-multiple length.  Each
# grid step copies output block i_eff straight onto bank tile ptr//tile + i_eff:
# no old-bank reads, no masking, no MXU; HBM traffic is exactly one read + one
# write of the enqueued rows.  Rows outside the window are preserved via the
# bank -> new_bank alias and never move through the kernel.
# ----------------------------------------------------------------------------
def _enqueue_kernel(ptr_ref, out_ref, bank_hbm_ref, newbank_ref):
    del ptr_ref, bank_hbm_ref                      # bank is alias-only, never read
    newbank_ref[...] = out_ref[...].astype(newbank_ref.dtype)


def _dequeue_and_enqueue(output, bank, bank_ptr, *, size, tile):
    batch, dim = output.shape
    n_tiles = size // tile
    n_steps = min(batch // tile, n_tiles)

    def _i_eff(i, ptr_ref):
        # Tiles actually written this call (truncating wrap case); clamping
        # re-visits the last tile idempotently instead of running off the bank.
        n_write_tiles = jnp.minimum(batch, size - ptr_ref[0]) // tile
        return jnp.minimum(i, jnp.maximum(n_write_tiles - 1, 0))

    def out_map(i, ptr_ref):                       # which output rows to copy
        return (_i_eff(i, ptr_ref), 0)

    def bank_map(i, ptr_ref):                      # which bank rows they land on
        return (ptr_ref[0] // tile + _i_eff(i, ptr_ref), 0)

    return pl.pallas_call(
        _enqueue_kernel,
        out_shape=jax.ShapeDtypeStruct((size, dim), bank.dtype),
        grid_spec=pltpu.PrefetchScalarGridSpec(
            num_scalar_prefetch=1,
            grid=(n_steps,),
            in_specs=[pl.BlockSpec((tile, dim), out_map),
                      pl.BlockSpec(memory_space=pl.ANY)],   # alias-only, no DMA
            out_specs=pl.BlockSpec((tile, dim), bank_map),
        ),
        # Inputs are (ptr, output, bank): alias bank (index 2) onto new_bank
        # (output 0) so unvisited rows never move through HBM.
        input_output_aliases={2: 0},
        compiler_params=pltpu.CompilerParams(
            # Duplicate (clamped) visits are possible in the truncating wrap
            # case, so this axis must stay serial.
            dimension_semantics=("arbitrary",),
            vmem_limit_bytes=32 * 1024 * 1024),
    )(bank_ptr.astype(jnp.int32), output, bank)


# TODO(synk): a misaligned write pointer (ptr % tile != 0 -- only reachable if
# the caller varies the batch size across steps or hand-feeds a pointer) has no
# clean Pallas path without a dynamic sublane roll; it falls back to XLA here.
def _enqueue_jax(output, bank, ptr):
    size = bank.shape[0]
    batch = output.shape[0]
    n_write = jnp.minimum(batch, size - ptr)
    src = jnp.arange(size, dtype=jnp.int32) - ptr
    gathered = jnp.take(output, jnp.clip(src, 0, batch - 1), axis=0)
    in_win = ((src >= 0) & (src < n_write))[:, None]
    return jnp.where(in_win, gathered.astype(bank.dtype), bank)


# ----------------------------------------------------------------------------
# Functional forward (module semantics).
# ----------------------------------------------------------------------------
@functools.partial(jax.jit, static_argnames=("size", "update", "tile"))
def memory_bank_forward(output, bank, bank_ptr, *, size, update=False, tile=None):
    """Returns (output, negatives, new_bank, new_bank_ptr).

    `negatives` is the pre-update bank in (size, dim) layout (rows = memory
    slots).  The PyTorch module returns it as (dim, size); the transpose is
    intentionally not materialized (it would cost an extra full HBM pass) --
    use `negatives.T` if the column layout is required.
    """
    if size == 0:
        return output, None, bank, bank_ptr

    batch, dim = output.shape
    assert bank.shape == (size, dim)

    if not update:
        # Pure query: negatives are just the (immutable) bank; no kernel work.
        return output, bank, bank, bank_ptr

    if tile is None:
        tile = _update_tile(size, batch, dim, jnp.dtype(bank.dtype).itemsize)
    if tile is None:
        new_bank = _enqueue_jax(output, bank, bank_ptr[0])
    else:
        assert size % tile == 0 and batch % tile == 0 and tile % 8 == 0
        new_bank = _dequeue_and_enqueue(output, bank, bank_ptr,
                                        size=size, tile=tile)

    new_ptr = jnp.where(bank_ptr + batch >= size,
                        jnp.zeros_like(bank_ptr), bank_ptr + batch)
    return output, bank, new_bank, new_ptr


def init_memory_bank(key, dim, size, dtype=jnp.float32):
    if size == 0:
        return None, None
    raw = jax.random.normal(key, (size, dim), dtype=dtype)
    bank = normalize_rows(raw)                     # per-slot L2 normalization
    bank_ptr = jnp.zeros((1,), jnp.int32)
    return bank, bank_ptr


# ----------------------------------------------------------------------------
# Demo / correctness checks (small, deterministic).
# ----------------------------------------------------------------------------
if __name__ == "__main__":
    def ref_update(out_arr, bank_arr, ptr, size):
        b = out_arr.shape[0]
        n = min(b, size - ptr)
        new = bank_arr.at[ptr:ptr + n].set(out_arr[:n].astype(bank_arr.dtype))
        new_ptr = 0 if ptr + b >= size else ptr + b
        return new, new_ptr

    key = jax.random.PRNGKey(0)
    k_bank, k_out, k_out2, k_out3 = jax.random.split(key, 4)

    # ---- config A: batch=8, dim=128, size=256 (Pallas fast path) -----------
    batch, dim, size = 8, 128, 256
    bank, bank_ptr = init_memory_bank(k_bank, dim, size)
    output = jax.random.normal(k_out, (batch, dim), dtype=jnp.float32)

    # Query only: no kernel work, negatives == bank, state unchanged.
    out0, neg0, bank1, ptr1 = memory_bank_forward(
        output, bank, bank_ptr, size=size, update=False)
    assert out0.shape == (batch, dim)
    assert neg0.shape == (size, dim)
    assert jnp.array_equal(neg0, bank) and jnp.array_equal(bank1, bank)
    assert int(ptr1[0]) == 0

    # Init normalization: each memory slot is unit length (== torch's dim=0
    # normalization of the (dim, size) bank).
    norms = jnp.sqrt(jnp.sum(neg0.astype(jnp.float32) ** 2, axis=-1))
    assert jnp.allclose(norms, 1.0, atol=1e-5)

    # Updates at pointer positions reachable by the module itself (multiples
    # of batch), including the wrap at the end of the bank.
    state_bank = bank
    for ptr_val in (0, 8, 128, size - batch):
        state_ptr = jnp.array([ptr_val], jnp.int32)
        prev = state_bank
        _, neg, state_bank, state_ptr = memory_bank_forward(
            output, state_bank, state_ptr, size=size, update=True)
        ref_bank, ref_ptr = ref_update(output, prev, ptr_val, size)
        assert jnp.array_equal(neg, prev)            # snapshot taken before update
        assert jnp.allclose(state_bank, ref_bank)    # enqueue (incl. wrap) ok
        assert int(state_ptr[0]) == ref_ptr          # pointer advance / reset

    # ---- config B: batch=16, size=40 (truncating wrap, duplicate grid steps)
    batch_b, size_b = 16, 40
    bank_b, ptr_b = init_memory_bank(k_bank, dim, size_b)
    out_b = jax.random.normal(k_out2, (batch_b, dim), dtype=jnp.float32)
    ptr_host = 0
    for _ in range(3):                               # 0 -> 16 -> 32 -> wrap to 0
        prev = bank_b
        _, _, bank_b, ptr_b = memory_bank_forward(
            out_b, bank_b, ptr_b, size=size_b, update=True)
        ref_bank, ptr_host = ref_update(out_b, prev, ptr_host, size_b)
        assert jnp.allclose(bank_b, ref_bank)
        assert int(ptr_b[0]) == ptr_host

    # ---- config C: batch=6, size=20 (no 8-aligned tile -> pure-JAX fallback)
    batch_c, size_c = 6, 20
    bank_c, ptr_c = init_memory_bank(k_bank, dim, size_c)
    out_c = jax.random.normal(k_out3, (batch_c, dim), dtype=jnp.float32)
    ptr_host = 0
    for _ in range(4):                               # 0 -> 6 -> 12 -> 18 -> wrap
        prev = bank_c
        _, _, bank_c, ptr_c = memory_bank_forward(
            out_c, bank_c, ptr_c, size=size_c, update=True)
        ref_bank, ptr_host = ref_update(out_c, prev, ptr_host, size_c)
        assert jnp.allclose(bank_c, ref_bank)
        assert int(ptr_c[0]) == ptr_host

    # size == 0: memory bank disabled.
    o, n, b0, p0 = memory_bank_forward(output, None, None, size=0, update=True)
    assert n is None and b0 is None

    jax.block_until_ready((state_bank, bank_b, bank_c))
    print("KERNEL_OK")
</pallas_src>

<mosaic_0001>
module attributes {stable_mosaic.version = 11 : i64} {
  func.func @_normalize_kernel(%arg0: i32, %arg1: memref<256x128xf32, #tpu.memory_space<vmem>>, %arg2: memref<256x128xf32, #tpu.memory_space<vmem>>) attributes {dimension_semantics = [#tpu.dimension_semantics<parallel>], iteration_bounds = array<i64: 1>, scalar_prefetch = 0 : i64, scratch_operands = 0 : i64, tpu.core_type = #tpu.core_type<tc>, window_params = [{transform_indices = @transform_0, window_bounds = array<i64: 256, 128>}, {transform_indices = @transform_1, window_bounds = array<i64: 256, 128>}]} {
    %c0 = arith.constant 0 : index
    %c0_0 = arith.constant 0 : index
    %0 = vector.load %arg1[%c0, %c0_0] : memref<256x128xf32, #tpu.memory_space<vmem>>, vector<256x128xf32>
    %1 = arith.mulf %0, %0 : vector<256x128xf32>
    %cst = arith.constant dense<0.000000e+00> : vector<256xf32>
    %2 = vector.multi_reduction <add>, %1, %cst [1] : vector<256x128xf32> to vector<256xf32>
    %3 = vector.shape_cast %2 : vector<256xf32> to vector<256x1xf32>
    %cst_1 = arith.constant 1.000000e-24 : f32
    %4 = vector.broadcast %cst_1 : f32 to vector<256x1xf32>
    %5 = arith.maximumf %3, %4 : vector<256x1xf32>
    %6 = math.rsqrt %5 : vector<256x1xf32>
    %7 = vector.broadcast %6 : vector<256x1xf32> to vector<256x128xf32>
    %8 = arith.mulf %0, %7 : vector<256x128xf32>
    %c0_2 = arith.constant 0 : index
    %c0_3 = arith.constant 0 : index
    %9 = vector.load %arg2[%c0_2, %c0_3] : memref<256x128xf32, #tpu.memory_space<vmem>>, vector<256x128xf32>
    tpu.vector_store %arg2[%c0_2, %c0_3], %8 {strides = array<i32>} : memref<256x128xf32, #tpu.memory_space<vmem>>, vector<256x128xf32>,
    return
  }
  func.func @transform_0(%arg0: i32) -> (i32, i32) {
    %c0_i32 = arith.constant 0 : i32
    %c0_i32_0 = arith.constant 0 : i32
    return %arg0, %c0_i32 : i32, i32
  }
  func.func @transform_1(%arg0: i32) -> (i32, i32) {
    %c0_i32 = arith.constant 0 : i32
    %c0_i32_0 = arith.constant 0 : i32
    return %arg0, %c0_i32 : i32, i32
  }
}

</mosaic_0001>

<bundles_post_ra>
// kernel: tpu_custom_call.1
= control target key start
LH: loop header
LB: loop body
LE: loop exit
PB: predicated region body
PF: predicated region fallthrough
CT: control target
= control target key end

     0   :  { %6 = vsyncpa [#allocation3], 0  ;;  %s616_s0 = inlined_call_operand.hbm [shape: f32[256,128], index: 0, kind: input, shape index: {}]   ;;  %s617_s1 = inlined_call_operand.hbm [shape: f32[256,128], index: 1, kind: output, shape index: {}]  }
   0x1   :  { %7 = vsyncpa [#allocation4], 0  ;;  %s412_s6 = smov [#allocation2]   ;;  %s364_s10 = scalar_lea.hbm %s616_s0, 4096 }
   0x2   :  { %s13_s7 = sshll.u32 %s412_s6, 4  ;;  %p365_p0 = scmp.ne.s32.totalorder %s616_s0, %s364_s10  ;;  %s14_s7 = int_to_ptr.vmem [resolvable:$true] %s13_s7 }
   0x3   :  { %p368_p1 = scmp.lt.u32.totalorder %s364_s10, %s616_s0 }
   0x5   :  { %p370_p2 = pnand %p368_p1, %p365_p0 }
   0x7   :  { %373 = shalt.err (!%p370_p2)
}
   0x8   :  { %s374_s15 = scalar_lea.vmem %s14_s7, 4096  ;;  %p379_p4 = scmp.lt.s32.totalorder %s14_s7, %s14_s7 }
   0x9   :  { %p375_p3 = scmp.ne.s32.totalorder %s14_s7, %s374_s15  ;;  %p380_p5 = scmp.lt.s32.totalorder %s374_s15, %s374_s15 }
   0xb   :  { %p381_p6 = por %p380_p5, %p379_p4 }
   0xd   :  { %p382_p7 = pnand %p381_p6, %p375_p3 }
   0xf   :  { %385 = shalt.err (!%p382_p7)
}
  0x10   :  { %s413_s16 = smov 128   ;;  %s414_s17 = smov 8  }
  0x11   :  { %19 = dma.hbm_to_vmem [thread:$0]  %s616_s0, 4096, %s14_s7, [#allocation3], %s413_s16, %s413_s16, %s414_s17  }
  0x12   :  { %408 = dma.done.wait [#allocation3], 4096  }
  0x13   :  { %409 = vsyncadd [#allocation3], 4294963200  ;;  %v441_v0 = vld [vmem:[#allocation2 + $0x10] sm:$0xff]  ;;  %v443_v1 = vld [vmem:[#allocation2] sm:$0xff]  ;;  %s415_s0 = smov [#allocation5]  }
  0x14   :  { %v445_v2 = vld [vmem:[#allocation2 + $0x18] sm:$0xff]  ;;  %v57_v3 = vmul.f32 %v441_v0, %v441_v0  ;;  %v55_v4 = vmul.f32 %v443_v1, %v443_v1  ;;  %v451_v5 = vld [vmem:[#allocation2 + $0x8] sm:$0xff]  ;;  %v459_v9 = vld [vmem:[#allocation2 + $0x20] sm:$0xff]  ;;  %s284_s20 = sshll.u32 %s415_s0, 4  ;;  %s285_s20 = int_to_ptr.vmem [resolvable:$true] %s284_s20 }
  0x15   :  { %v58_v6 = vmul.f32 %v445_v2, %v445_v2  ;;  %v56_v7 = vmul.f32 %v451_v5, %v451_v5  ;;  %v457_v8 = vld [vmem:[#allocation2 + $0x28] sm:$0xff]  ;;  %v59_v11 = vmul.f32 %v459_v9, %v459_v9  ;;  %v465_v12 = vld [vmem:[#allocation2 + $0x38] sm:$0xff]  ;;  %v467_v13 = vld [vmem:[#allocation2 + $0x30] sm:$0xff]  ;;  %s386_s21 = scalar_lea.vmem %s285_s20, 4096  ;;  %p391_p9 = scmp.lt.s32.totalorder %s285_s20, %s285_s20 }
  0x16   :  { %91 = vadd.xlane.f32.xlu1 %v57_v3  ;;  %87 = vadd.xlane.f32.xlu0 %v55_v4  ;;  %v60_v10 = vmul.f32 %v457_v8, %v457_v8  ;;  %v62_v14 = vmul.f32 %v465_v12, %v465_v12  ;;  %v61_v15 = vmul.f32 %v467_v13, %v467_v13  ;;  %v473_v16 = vld [vmem:[#allocation2 + $0x48] sm:$0xff]  ;;  %v475_v17 = vld [vmem:[#allocation2 + $0x40] sm:$0xff]  ;;  %v481_v20 = vld [vmem:[#allocation2 + $0x58] sm:$0xff]  ;;  %p387_p8 = scmp.ne.s32.totalorder %s285_s20, %s386_s21  ;;  %p392_p10 = scmp.lt.s32.totalorder %s386_s21, %s386_s21 }
  0x17   :  { %v64_v18 = vmul.f32 %v473_v16, %v473_v16  ;;  %v63_v19 = vmul.f32 %v475_v17, %v475_v17  ;;  %v483_v21 = vld [vmem:[#allocation2 + $0x50] sm:$0xff]  ;;  %v66_v22 = vmul.f32 %v481_v20, %v481_v20  ;;  %v489_v24 = vld [vmem:[#allocation2 + $0x68] sm:$0xff]  ;;  %v491_v25 = vld [vmem:[#allocation2 + $0x60] sm:$0xff] }
  0x18   :  { %v65_v23 = vmul.f32 %v483_v21, %v483_v21  ;;  %v68_v26 = vmul.f32 %v489_v24, %v489_v24  ;;  %v67_v27 = vmul.f32 %v491_v25, %v491_v25  ;;  %v497_v28 = vld [vmem:[#allocation2 + $0x78] sm:$0xff]  ;;  %v499_v29 = vld [vmem:[#allocation2 + $0x70] sm:$0xff]  ;;  %v505_v32 = vld [vmem:[#allocation2 + $0x88] sm:$0xff]  ;;  %p393_p11 = por %p392_p10, %p391_p9 }
  0x19   :  { %v70_v30 = vmul.f32 %v497_v28, %v497_v28  ;;  %v69_v31 = vmul.f32 %v499_v29, %v499_v29  ;;  %v507_v33 = vld [vmem:[#allocation2 + $0x80] sm:$0xff]  ;;  %v72_v34 = vmul.f32 %v505_v32, %v505_v32  ;;  %v513_v36 = vld [vmem:[#allocation2 + $0x98] sm:$0xff]  ;;  %v515_v37 = vld [vmem:[#allocation2 + $0x90] sm:$0xff] }
  0x1a   :  { %93 = vadd.xlane.f32.xlu1 %v58_v6  ;;  %89 = vadd.xlane.f32.xlu0 %v56_v7  ;;  %v71_v35 = vmul.f32 %v507_v33, %v507_v33  ;;  %v74_v38 = vmul.f32 %v513_v36, %v513_v36  ;;  %v73_v39 = vmul.f32 %v515_v37, %v515_v37  ;;  %v521_v40 = vld [vmem:[#allocation2 + $0xa8] sm:$0xff]  ;;  %v523_v41 = vld [vmem:[#allocation2 + $0xa0] sm:$0xff]  ;;  %v529_v44 = vld [vmem:[#allocation2 + $0xb8] sm:$0xff]  ;;  %p394_p12 = pnand %p393_p11, %p387_p8 }
  0x1b   :  { %v76_v42 = vmul.f32 %v521_v40, %v521_v40  ;;  %v75_v43 = vmul.f32 %v523_v41, %v523_v41  ;;  %v531_v45 = vld [vmem:[#allocation2 + $0xb0] sm:$0xff]  ;;  %v78_v46 = vmul.f32 %v529_v44, %v529_v44  ;;  %v537_v48 = vld [vmem:[#allocation2 + $0xc8] sm:$0xff]  ;;  %v539_v49 = vld [vmem:[#allocation2 + $0xc0] sm:$0xff] }
  0x1c   :  { %v77_v47 = vmul.f32 %v531_v45, %v531_v45  ;;  %v80_v50 = vmul.f32 %v537_v48, %v537_v48  ;;  %v79_v51 = vmul.f32 %v539_v49, %v539_v49  ;;  %v545_v52 = vld [vmem:[#allocation2 + $0xd8] sm:$0xff]  ;;  %v547_v53 = vld [vmem:[#allocation2 + $0xd0] sm:$0xff]  ;;  %v553_v56 = vld [vmem:[#allocation2 + $0xe8] sm:$0xff] }
  0x1d   :  { %v82_v54 = vmul.f32 %v545_v52, %v545_v52  ;;  %v81_v55 = vmul.f32 %v547_v53, %v547_v53  ;;  %v555_v57 = vld [vmem:[#allocation2 + $0xe0] sm:$0xff]  ;;  %v84_v58 = vmul.f32 %v553_v56, %v553_v56  ;;  %v561_v60 = vld [vmem:[#allocation2 + $0xf8] sm:$0xff]  ;;  %v563_v61 = vld [vmem:[#allocation2 + $0xf0] sm:$0xff] }
  0x1e   :  { %97 = vadd.xlane.f32.xlu1 %v60_v10  ;;  %95 = vadd.xlane.f32.xlu0 %v59_v11  ;;  %v83_v59 = vmul.f32 %v555_v57, %v555_v57  ;;  %v86_v62 = vmul.f32 %v561_v60, %v561_v60  ;;  %v85_v63 = vmul.f32 %v563_v61, %v563_v61 }
  0x22   :  { %101 = vadd.xlane.f32.xlu1 %v62_v14  ;;  %99 = vadd.xlane.f32.xlu0 %v61_v15 }
  0x26   :  { %105 = vadd.xlane.f32.xlu1 %v64_v18  ;;  %103 = vadd.xlane.f32.xlu0 %v63_v19 }
  0x2a   :  { %109 = vadd.xlane.f32.xlu1 %v66_v22  ;;  %107 = vadd.xlane.f32.xlu0 %v65_v23 }
  0x2e   :  { %113 = vadd.xlane.f32.xlu1 %v68_v26  ;;  %111 = vadd.xlane.f32.xlu0 %v67_v27 }
  0x32   :  { %117 = vadd.xlane.f32.xlu1 %v70_v30  ;;  %115 = vadd.xlane.f32.xlu0 %v69_v31 }
  0x36   :  { %121 = vadd.xlane.f32.xlu1 %v72_v34  ;;  %119 = vadd.xlane.f32.xlu0 %v71_v35 }
  0x3a   :  { %125 = vadd.xlane.f32.xlu1 %v74_v38  ;;  %123 = vadd.xlane.f32.xlu0 %v73_v39 }
  0x3e   :  { %129 = vadd.xlane.f32.xlu1 %v76_v42  ;;  %127 = vadd.xlane.f32.xlu0 %v75_v43 }
  0x42   :  { %133 = vadd.xlane.f32.xlu1 %v78_v46  ;;  %131 = vadd.xlane.f32.xlu0 %v77_v47 }
  0x46   :  { %137 = vadd.xlane.f32.xlu1 %v80_v50  ;;  %135 = vadd.xlane.f32.xlu0 %v79_v51 }
  0x4a   :  { %141 = vadd.xlane.f32.xlu1 %v82_v54  ;;  %139 = vadd.xlane.f32.xlu0 %v81_v55 }
  0x4e   :  { %145 = vadd.xlane.f32.xlu1 %v84_v58  ;;  %143 = vadd.xlane.f32.xlu0 %v83_v59 }
  0x52   :  { %149 = vadd.xlane.f32.xlu1 %v86_v62  ;;  %147 = vadd.xlane.f32.xlu0 %v85_v63 }
  0xa3   :  { %v92_v3 = vpop.xlane.xlu1 %91  ;;  %v88_v4 = vpop.xlane.xlu0 %87 }
  0xa4   :  { %v153_v6 = vmax.f32 %v92_v3, 1e-24  ;;  %v151_v7 = vmax.f32 %v88_v4, 1e-24 }
  0xa6   :  { %300 = vrsqrt.f32 %v153_v6 }
  0xa7   :  { %302 = vrsqrt.f32 %v151_v7  ;;  %v94_v10 = vpop.xlane.xlu1 %93  ;;  %v90_v11 = vpop.xlane.xlu0 %89 }
  0xa8   :  { %v154_v14 = vmax.f32 %v94_v10, 1e-24  ;;  %v152_v15 = vmax.f32 %v90_v11, 1e-24 }
  0xaa   :  { %304 = vrsqrt.f32 %v154_v14 }
  0xab   :  { %306 = vrsqrt.f32 %v152_v15  ;;  %v98_v18 = vpop.xlane.xlu1 %97  ;;  %v96_v19 = vpop.xlane.xlu0 %95 }
  0xac   :  { %v156_v22 = vmax.f32 %v98_v18, 1e-24  ;;  %v155_v23 = vmax.f32 %v96_v19, 1e-24 }
  0xae   :  { %308 = vrsqrt.f32 %v156_v22 }
  0xaf   :  { %310 = vrsqrt.f32 %v155_v23  ;;  %v102_v26 = vpop.xlane.xlu1 %101  ;;  %v100_v27 = vpop.xlane.xlu0 %99 }
  0xb0   :  { %v301_v30 = vpop.eup %300  ;;  %v158_v31 = vmax.f32 %v102_v26, 1e-24  ;;  %v157_v34 = vmax.f32 %v100_v27, 1e-24 }
  0xb1   :  { %v303_v35 = vpop.eup %302  ;;  %v217_v38 = vmul.f32 %v301_v30, %v441_v0 }
  0xb2   :  { %v215_v39 = vmul.f32 %v303_v35, %v443_v1  ;;  %312 = vrsqrt.f32 %v158_v31 }
  0xb3   :  { %249 = vst [vmem:[#allocation5 + $0x10] sm:$0xff] %v217_v38  ;;  %314 = vrsqrt.f32 %v157_v34  ;;  %v106_v42 = vpop.xlane.xlu1 %105  ;;  %v104_v43 = vpop.xlane.xlu0 %103 }
  0xb4   :  { %v305_v46 = vpop.eup %304  ;;  %247 = vst [vmem:[#allocation5] sm:$0xff] %v215_v39  ;;  %v160_v47 = vmax.f32 %v106_v42, 1e-24  ;;  %v159_v50 = vmax.f32 %v104_v43, 1e-24 }
  0xb5   :  { %v307_v51 = vpop.eup %306  ;;  %v218_v54 = vmul.f32 %v305_v46, %v445_v2 }
  0xb6   :  { %v216_v55 = vmul.f32 %v307_v51, %v451_v5  ;;  %316 = vrsqrt.f32 %v160_v47 }
  0xb7   :  { %250 = vst [vmem:[#allocation5 + $0x18] sm:$0xff] %v218_v54  ;;  %318 = vrsqrt.f32 %v159_v50  ;;  %v110_v0 = vpop.xlane.xlu1 %109  ;;  %v108_v58 = vpop.xlane.xlu0 %107 }
  0xb8   :  { %v309_v1 = vpop.eup %308  ;;  %248 = vst [vmem:[#allocation5 + $0x8] sm:$0xff] %v216_v55  ;;  %v162_v59 = vmax.f32 %v110_v0, 1e-24  ;;  %v161_v62 = vmax.f32 %v108_v58, 1e-24 }
  0xb9   :  { %v311_v63 = vpop.eup %310  ;;  %v220_v3 = vmul.f32 %v309_v1, %v457_v8 }
  0xba   :  { %v219_v4 = vmul.f32 %v311_v63, %v459_v9  ;;  %320 = vrsqrt.f32 %v162_v59 }
  0xbb   :  { %252 = vst [vmem:[#allocation5 + $0x28] sm:$0xff] %v220_v3  ;;  %322 = vrsqrt.f32 %v161_v62  ;;  %v114_v2 = vpop.xlane.xlu1 %113  ;;  %v112_v6 = vpop.xlane.xlu0 %111 }
  0xbc   :  { %v313_v5 = vpop.eup %312  ;;  %251 = vst [vmem:[#allocation5 + $0x20] sm:$0xff] %v219_v4  ;;  %v164_v7 = vmax.f32 %v114_v2, 1e-24  ;;  %v163_v10 = vmax.f32 %v112_v6, 1e-24 }
  0xbd   :  { %v315_v11 = vpop.eup %314  ;;  %v222_v14 = vmul.f32 %v313_v5, %v465_v12 }
  0xbe   :  { %v221_v15 = vmul.f32 %v315_v11, %v467_v13  ;;  %324 = vrsqrt.f32 %v164_v7 }
  0xbf   :  { %254 = vst [vmem:[#allocation5 + $0x38] sm:$0xff] %v222_v14  ;;  %326 = vrsqrt.f32 %v163_v10  ;;  %v118_v8 = vpop.xlane.xlu1 %117  ;;  %v116_v18 = vpop.xlane.xlu0 %115 }
  0xc0   :  { %v317_v9 = vpop.eup %316  ;;  %253 = vst [vmem:[#allocation5 + $0x30] sm:$0xff] %v221_v15  ;;  %v166_v19 = vmax.f32 %v118_v8, 1e-24  ;;  %v165_v22 = vmax.f32 %v116_v18, 1e-24 }
  0xc1   :  { %v319_v23 = vpop.eup %318  ;;  %v224_v26 = vmul.f32 %v317_v9, %v473_v16 }
  0xc2   :  { %v223_v27 = vmul.f32 %v319_v23, %v475_v17  ;;  %328 = vrsqrt.f32 %v166_v19 }
  0xc3   :  { %256 = vst [vmem:[#allocation5 + $0x48] sm:$0xff] %v224_v26  ;;  %330 = vrsqrt.f32 %v165_v22  ;;  %v122_v12 = vpop.xlane.xlu1 %121  ;;  %v120_v30 = vpop.xlane.xlu0 %119 }
  0xc4   :  { %v321_v13 = vpop.eup %320  ;;  %255 = vst [vmem:[#allocation5 + $0x40] sm:$0xff] %v223_v27  ;;  %v168_v31 = vmax.f32 %v122_v12, 1e-24  ;;  %v167_v34 = vmax.f32 %v120_v30, 1e-24 }
  0xc5   :  { %v323_v35 = vpop.eup %322  ;;  %v226_v38 = vmul.f32 %v321_v13, %v481_v20 }
  0xc6   :  { %v225_v39 = vmul.f32 %v323_v35, %v483_v21  ;;  %332 = vrsqrt.f32 %v168_v31 }
  0xc7   :  { %258 = vst [vmem:[#allocation5 + $0x58] sm:$0xff] %v226_v38  ;;  %334 = vrsqrt.f32 %v167_v34  ;;  %v126_v16 = vpop.xlane.xlu1 %125  ;;  %v124_v42 = vpop.xlane.xlu0 %123 }
  0xc8   :  { %v325_v17 = vpop.eup %324  ;;  %257 = vst [vmem:[#allocation5 + $0x50] sm:$0xff] %v225_v39  ;;  %v170_v43 = vmax.f32 %v126_v16, 1e-24  ;;  %v169_v46 = vmax.f32 %v124_v42, 1e-24 }
  0xc9   :  { %v327_v47 = vpop.eup %326  ;;  %v228_v50 = vmul.f32 %v325_v17, %v489_v24 }
  0xca   :  { %v227_v51 = vmul.f32 %v327_v47, %v491_v25  ;;  %336 = vrsqrt.f32 %v170_v43 }
  0xcb   :  { %260 = vst [vmem:[#allocation5 + $0x68] sm:$0xff] %v228_v50  ;;  %338 = vrsqrt.f32 %v169_v46  ;;  %v130_v20 = vpop.xlane.xlu1 %129  ;;  %v128_v54 = vpop.xlane.xlu0 %127 }
  0xcc   :  { %v329_v21 = vpop.eup %328  ;;  %259 = vst [vmem:[#allocation5 + $0x60] sm:$0xff] %v227_v51  ;;  %v172_v55 = vmax.f32 %v130_v20, 1e-24  ;;  %v171_v0 = vmax.f32 %v128_v54, 1e-24 }
  0xcd   :  { %v331_v58 = vpop.eup %330  ;;  %v230_v1 = vmul.f32 %v329_v21, %v497_v28 }
  0xce   :  { %v229_v59 = vmul.f32 %v331_v58, %v499_v29  ;;  %340 = vrsqrt.f32 %v172_v55 }
  0xcf   :  { %262 = vst [vmem:[#allocation5 + $0x78] sm:$0xff] %v230_v1  ;;  %342 = vrsqrt.f32 %v171_v0  ;;  %v134_v24 = vpop.xlane.xlu1 %133  ;;  %v132_v62 = vpop.xlane.xlu0 %131 }
  0xd0   :  { %v333_v25 = vpop.eup %332  ;;  %261 = vst [vmem:[#allocation5 + $0x70] sm:$0xff] %v229_v59  ;;  %v174_v63 = vmax.f32 %v134_v24, 1e-24  ;;  %v173_v3 = vmax.f32 %v132_v62, 1e-24 }
  0xd1   :  { %v335_v4 = vpop.eup %334  ;;  %v232_v2 = vmul.f32 %v333_v25, %v505_v32 }
  0xd2   :  { %v231_v6 = vmul.f32 %v335_v4, %v507_v33  ;;  %344 = vrsqrt.f32 %v174_v63 }
  0xd3   :  { %264 = vst [vmem:[#allocation5 + $0x88] sm:$0xff] %v232_v2  ;;  %346 = vrsqrt.f32 %v173_v3  ;;  %v138_v28 = vpop.xlane.xlu1 %137  ;;  %v136_v5 = vpop.xlane.xlu0 %135 }
  0xd4   :  { %v337_v29 = vpop.eup %336  ;;  %263 = vst [vmem:[#allocation5 + $0x80] sm:$0xff] %v231_v6  ;;  %v176_v7 = vmax.f32 %v138_v28, 1e-24  ;;  %v175_v10 = vmax.f32 %v136_v5, 1e-24 }
  0xd5   :  { %v339_v11 = vpop.eup %338  ;;  %v234_v14 = vmul.f32 %v337_v29, %v513_v36 }
  0xd6   :  { %v233_v15 = vmul.f32 %v339_v11, %v515_v37  ;;  %348 = vrsqrt.f32 %v176_v7 }
  0xd7   :  { %266 = vst [vmem:[#allocation5 + $0x98] sm:$0xff] %v234_v14  ;;  %350 = vrsqrt.f32 %v175_v10  ;;  %v142_v32 = vpop.xlane.xlu1 %141  ;;  %v140_v8 = vpop.xlane.xlu0 %139 }
  0xd8   :  { %v341_v33 = vpop.eup %340  ;;  %265 = vst [vmem:[#allocation5 + $0x90] sm:$0xff] %v233_v15  ;;  %v178_v18 = vmax.f32 %v142_v32, 1e-24  ;;  %v177_v9 = vmax.f32 %v140_v8, 1e-24 }
  0xd9   :  { %v343_v19 = vpop.eup %342  ;;  %v236_v22 = vmul.f32 %v341_v33, %v521_v40 }
  0xda   :  { %v235_v23 = vmul.f32 %v343_v19, %v523_v41  ;;  %352 = vrsqrt.f32 %v178_v18 }
  0xdb   :  { %268 = vst [vmem:[#allocation5 + $0xa8] sm:$0xff] %v236_v22  ;;  %354 = vrsqrt.f32 %v177_v9  ;;  %v146_v36 = vpop.xlane.xlu1 %145  ;;  %v144_v26 = vpop.xlane.xlu0 %143 }
  0xdc   :  { %v345_v37 = vpop.eup %344  ;;  %267 = vst [vmem:[#allocation5 + $0xa0] sm:$0xff] %v235_v23  ;;  %v180_v27 = vmax.f32 %v146_v36, 1e-24  ;;  %v179_v12 = vmax.f32 %v144_v26, 1e-24 }
  0xdd   :  { %v347_v30 = vpop.eup %346  ;;  %v238_v13 = vmul.f32 %v345_v37, %v529_v44 }
  0xde   :  { %v237_v31 = vmul.f32 %v347_v30, %v531_v45  ;;  %356 = vrsqrt.f32 %v180_v27 }
  0xdf   :  { %270 = vst [vmem:[#allocation5 + $0xb8] sm:$0xff] %v238_v13  ;;  %358 = vrsqrt.f32 %v179_v12  ;;  %v150_v40 = vpop.xlane.xlu1 %149  ;;  %v148_v34 = vpop.xlane.xlu0 %147 }
  0xe0   :  { %v349_v41 = vpop.eup %348  ;;  %269 = vst [vmem:[#allocation5 + $0xb0] sm:$0xff] %v237_v31  ;;  %v182_v35 = vmax.f32 %v150_v40, 1e-24  ;;  %v181_v38 = vmax.f32 %v148_v34, 1e-24 }
  0xe1   :  { %v351_v39 = vpop.eup %350  ;;  %v240_v16 = vmul.f32 %v349_v41, %v537_v48 }
  0xe2   :  { %v239_v42 = vmul.f32 %v351_v39, %v539_v49  ;;  %360 = vrsqrt.f32 %v182_v35 }
  0xe3   :  { %272 = vst [vmem:[#allocation5 + $0xc8] sm:$0xff] %v240_v16  ;;  %362 = vrsqrt.f32 %v181_v38 }
  0xe4   :  { %v353_v44 = vpop.eup %352  ;;  %271 = vst [vmem:[#allocation5 + $0xc0] sm:$0xff] %v239_v42 }
  0xe5   :  { %v355_v45 = vpop.eup %354  ;;  %v242_v17 = vmul.f32 %v353_v44, %v545_v52 }
  0xe6   :  { %v241_v43 = vmul.f32 %v355_v45, %v547_v53 }
  0xe7   :  { %274 = vst [vmem:[#allocation5 + $0xd8] sm:$0xff] %v242_v17 }
  0xe8   :  { %v357_v46 = vpop.eup %356  ;;  %273 = vst [vmem:[#allocation5 + $0xd0] sm:$0xff] %v241_v43 }
  0xe9   :  { %v359_v47 = vpop.eup %358  ;;  %v244_v50 = vmul.f32 %v357_v46, %v553_v56 }
  0xea   :  { %v243_v48 = vmul.f32 %v359_v47, %v555_v57 }
  0xeb   :  { %276 = vst [vmem:[#allocation5 + $0xe8] sm:$0xff] %v244_v50 }
  0xec   :  { %v361_v49 = vpop.eup %360  ;;  %275 = vst [vmem:[#allocation5 + $0xe0] sm:$0xff] %v243_v48 }
  0xed   :  { %v363_v51 = vpop.eup %362  ;;  %v246_v20 = vmul.f32 %v361_v49, %v561_v60 }
  0xee   :  { %v245_v52 = vmul.f32 %v363_v51, %v563_v61 }
  0xef   :  { %278 = vst [vmem:[#allocation5 + $0xf8] sm:$0xff] %v246_v20 }
  0xf0   :  { %277 = vst [vmem:[#allocation5 + $0xf0] sm:$0xff] %v245_v52 }
  0xf1   :  { %397 = shalt.err (!%p394_p12)
}
  0xf2   :  { %s398_s24 = scalar_lea.hbm %s617_s1, 4096 }
  0xf3   :  { %p399_p13 = scmp.ne.s32.totalorder %s617_s1, %s398_s24  ;;  %p402_p0 = scmp.lt.u32.totalorder %s398_s24, %s617_s1 }
  0xf5   :  { %p404_p1 = pnand %p402_p0, %p399_p13 }
  0xf7   :  { %407 = shalt.err (!%p404_p1)
}
  0xf8   :  { %290 = dma.vmem_to_hbm [thread:$0]  %s285_s20, 4096, %s617_s1, [#allocation4], %s413_s16, %s413_s16, %s414_s17  }
  0xf9   :  { %410 = dma.done.wait [#allocation4], 4096  }
  0xfa   :  { %411 = vsyncadd [#allocation4], 4294963200 }
  0xfb   :  { %294 = vsyncpa [#allocation3], 1 }
  0xfc   :  { %295 = vsyncpa [#allocation4], 1 }

</bundles_post_ra>
